<compile_context>
chip_gen: v7x
topology: tpu7x:2x2x1
jax: 0.10.0
libtpu: 0.0.40
codegen_flags: <defaults>
</compile_context>

<pallas_src>
import functools

import jax
import jax.numpy as jnp
from jax.experimental import pallas as pl
from jax.experimental.pallas import tpu as pltpu


def _bn_relu_train(x, gamma, beta, eps=1e-5):
    """BatchNorm1d (training-mode batch stats, biased var) folded to one
    scale/shift, followed by ReLU."""
    inv_n = 1.0 / x.shape[0]
    mean = jnp.sum(x, axis=0, keepdims=True) * inv_n
    ex2 = jnp.sum(x * x, axis=0, keepdims=True) * inv_n
    var = ex2 - mean * mean
    scale = gamma * jax.lax.rsqrt(var + eps)
    shift = beta - mean * scale
    return jnp.maximum(x * scale + shift, 0.0)


def bi_gated_gcn_kernel(
    h_ref, e_ref, gsrc_ref, gdst_ref,
    wnode_ref, bnode_ref, wc_ref, bc_ref, ws2_ref, bs2_ref, fcat_ref,
    bnh_g_ref, bnh_b_ref, bne_g_ref, bne_b_ref,
    hsh_ref, eout_ref,
    *, out_dim, assign_dim,
):
    D = out_dim
    f32 = jnp.float32
    bf16 = jnp.bfloat16
    dot = lambda a, b: jnp.dot(a, b, preferred_element_type=f32)

    h = h_ref[...]
    e = e_ref[...]

    # --- Fused node projections: one [N, 5D] matmul instead of five [N, D].
    P = dot(h, wnode_ref[...]) + bnode_ref[...]
    Ah = P[:, 0 * D:1 * D]
    Bh = P[:, 1 * D:2 * D]
    Dh = P[:, 2 * D:3 * D]
    Eh = P[:, 3 * D:4 * D]
    s1 = jnp.maximum(P[:, 4 * D:5 * D], 0.0)

    # --- Edge projection.
    Ce = dot(e, wc_ref[...]) + bc_ref[...]

    # --- Sh = softmax(s2(relu(s1(h))), dim=1)  (reciprocal on the EUP).
    logits = dot(s1, ws2_ref[...]) + bs2_ref[...]
    m = jnp.max(logits, axis=1, keepdims=True)
    ex = jnp.exp(logits - m)
    Sh = ex * pl.reciprocal(jnp.sum(ex, axis=1, keepdims=True), approx=True)

    # --- Fold F into node space (gather is linear):
    #     gather_src(Sh) @ F_top == gather_src(Sh @ F_top), same for dst.
    SF = dot(Sh, fcat_ref[...])            # [N, 2D]
    U = Dh + SF[:, :D]                     # src-side contribution to e'
    V = Eh + SF[:, D:]                     # dst-side contribution to e'

    # --- Fused gathers via bf16 one-hot matmuls (f32 accumulation).
    gsrc = gsrc_ref[...]                   # [E, N] bf16
    gdst = gdst_ref[...]                   # [E, N] bf16
    src_cat = jnp.concatenate([U, Bh], axis=1).astype(bf16)   # [N, 2D]
    src_g = dot(gsrc, src_cat)             # [E, 2D]: [U_src | Bh_src]
    v_dst = dot(gdst, V.astype(bf16))      # [E, D]

    e_new = src_g[:, :D] + v_dst + Ce      # (Dh[src]+Eh[dst]) + Ce + Se
    Bh_src = src_g[:, D:]
    sigma = jax.nn.sigmoid(e_new)

    # --- Scatter-sum onto dst nodes: single transposed contraction of gdst
    #     over [Bh_src*sigma | sigma] (replaces the duplicated s_dst matrix).
    scat = jnp.concatenate([Bh_src * sigma, sigma], axis=1).astype(bf16)
    S = jax.lax.dot_general(gdst, scat, (((0,), (0,)), ((), ())),
                            preferred_element_type=f32)       # [N, 2D]
    h_new = Ah + S[:, :D] * pl.reciprocal(S[:, D:] + 1e-6, approx=True)

    # --- BatchNorm (training-mode batch stats) + ReLU; residual=False,
    #     dropout p=0.0 -> identity.
    h_new = _bn_relu_train(h_new, bnh_g_ref[...], bnh_b_ref[...])
    e_new = _bn_relu_train(e_new, bne_g_ref[...], bne_b_ref[...])

    # --- Pack h_out and Sh into one lane-denser slab; e_out separately.
    hsh_ref[...] = jnp.concatenate([h_new, Sh], axis=1)
    eout_ref[...] = e_new


def bi_gated_gcn_layer(h, e, src, dst, params):
    """Wrapper: fuses weights, builds bf16 one-hot gather matrices, calls the kernel."""
    N, d_in = h.shape
    E = e.shape[0]
    D = params["WA"].shape[1]
    adim = params["Ws2"].shape[1]

    # bf16 one-hot gather matrices (0/1 exact in bf16; halves HBM/VMEM traffic).
    g_src = jax.nn.one_hot(src, N, dtype=jnp.bfloat16)   # [E, N]
    g_dst = jax.nn.one_hot(dst, N, dtype=jnp.bfloat16)   # [E, N]

    # Host-side fusion of the five node projections and of F.
    w_node = jnp.concatenate(
        [params["WA"], params["WB"], params["WD"], params["WE"], params["Ws1"]], axis=1)
    b_node = jnp.concatenate(
        [params["bA"], params["bB"], params["bD"], params["bE"], params["bs1"]], axis=1)
    f_cat = jnp.concatenate([params["F_top"], params["F_bot"]], axis=1)   # [adim, 2D]

    inputs = (
        h, e, g_src, g_dst,
        w_node, b_node, params["WC"], params["bC"],
        params["Ws2"], params["bs2"], f_cat,
        params["bnh_g"], params["bnh_b"], params["bne_g"], params["bne_b"],
    )

    vmem = pl.BlockSpec(memory_space=pltpu.MemorySpace.VMEM)
    out_shape = (
        jax.ShapeDtypeStruct((N, D + adim), jnp.float32),   # [h_out | Sh]
        jax.ShapeDtypeStruct((E, D), jnp.float32),          # e_out
    )

    flops = 2 * (
        N * d_in * 5 * D        # fused node projections
        + E * d_in * D          # Ce
        + N * D * adim          # s2
        + N * adim * 2 * D      # Sh @ [F_top | F_bot]
        + E * N * 2 * D         # src gather
        + E * N * D             # dst gather
        + E * N * 2 * D         # dst scatter-sum
    )
    bytes_accessed = int(
        sum(int(a.size) * a.dtype.itemsize for a in inputs)
        + (N * (D + adim) + E * D) * 4
    )
    cost = pl.CostEstimate(flops=flops,
                           transcendentals=N * adim + E * D,
                           bytes_accessed=bytes_accessed)

    kernel = functools.partial(bi_gated_gcn_kernel, out_dim=D, assign_dim=adim)
    hsh, e_out = pl.pallas_call(
        kernel,
        out_shape=out_shape,
        in_specs=[vmem] * len(inputs),
        out_specs=(vmem, vmem),
        cost_estimate=cost,
    )(*inputs)

    return hsh[:, :D], e_out, hsh[:, D:]


def init_params(key, input_dim, output_dim, assign_dim):
    """Deterministic synthetic parameter init (PyTorch Linear shapes, pre-transposed)."""
    keys = jax.random.split(key, 16)
    scale_in = 1.0 / jnp.sqrt(input_dim)
    scale_out = 1.0 / jnp.sqrt(output_dim)

    def lin(kw, kb, din, dout, s):
        w = jax.random.uniform(kw, (din, dout), jnp.float32, -s, s)
        b = jax.random.uniform(kb, (1, dout), jnp.float32, -s, s)
        return w, b

    WA, bA = lin(keys[0], keys[1], input_dim, output_dim, scale_in)
    WB, bB = lin(keys[2], keys[3], input_dim, output_dim, scale_in)
    WC, bC = lin(keys[4], keys[5], input_dim, output_dim, scale_in)
    WD, bD = lin(keys[6], keys[7], input_dim, output_dim, scale_in)
    WE, bE = lin(keys[8], keys[9], input_dim, output_dim, scale_in)
    Ws1, bs1 = lin(keys[10], keys[11], input_dim, output_dim, scale_in)
    Ws2, bs2 = lin(keys[12], keys[13], output_dim, assign_dim, scale_out)
    # nn.Parameter(torch.FloatTensor(size=(2*assign_dim, output_dim))) is
    # uninitialized in the module; use a deterministic normal init here.
    Fmat = 0.1 * jax.random.normal(keys[14], (2 * assign_dim, output_dim), jnp.float32)
    return dict(
        WA=WA, bA=bA, WB=WB, bB=bB, WC=WC, bC=bC, WD=WD, bD=bD, WE=WE, bE=bE,
        Ws1=Ws1, bs1=bs1, Ws2=Ws2, bs2=bs2,
        F_top=Fmat[:assign_dim], F_bot=Fmat[assign_dim:],
        bnh_g=jnp.ones((1, output_dim), jnp.float32),
        bnh_b=jnp.zeros((1, output_dim), jnp.float32),
        bne_g=jnp.ones((1, output_dim), jnp.float32),
        bne_b=jnp.zeros((1, output_dim), jnp.float32),
    )


if __name__ == "__main__":
    input_dim = 32
    output_dim = 32
    assign_dim = 8
    num_nodes = 16
    num_edges = 48

    key = jax.random.PRNGKey(0)
    kh, ke, ks, kd, kp = jax.random.split(key, 5)

    h = jax.random.normal(kh, (num_nodes, input_dim), jnp.float32)
    e = jax.random.normal(ke, (num_edges, input_dim), jnp.float32)
    src = jax.random.randint(ks, (num_edges,), 0, num_nodes)
    dst = jax.random.randint(kd, (num_edges,), 0, num_nodes)

    params = init_params(kp, input_dim, output_dim, assign_dim)

    h_out, e_out, sh_out = bi_gated_gcn_layer(h, e, src, dst, params)
    jax.block_until_ready((h_out, e_out, sh_out))

    assert h_out.shape == (num_nodes, output_dim)
    assert e_out.shape == (num_edges, output_dim)
    assert sh_out.shape == (num_nodes, assign_dim)
    # TODO(synk): dropout is identity (p=0.0, deterministic); BN uses training-mode batch stats.
    print("KERNEL_OK")
</pallas_src>

<mosaic_0001>
module attributes {stable_mosaic.version = 11 : i64} {
  func.func @bi_gated_gcn_kernel(%arg0: memref<16x32xf32, #tpu.memory_space<vmem>>, %arg1: memref<48x32xf32, #tpu.memory_space<vmem>>, %arg2: memref<48x16xbf16, #tpu.memory_space<vmem>>, %arg3: memref<48x16xbf16, #tpu.memory_space<vmem>>, %arg4: memref<32x160xf32, #tpu.memory_space<vmem>>, %arg5: memref<1x160xf32, #tpu.memory_space<vmem>>, %arg6: memref<32x32xf32, #tpu.memory_space<vmem>>, %arg7: memref<1x32xf32, #tpu.memory_space<vmem>>, %arg8: memref<32x8xf32, #tpu.memory_space<vmem>>, %arg9: memref<1x8xf32, #tpu.memory_space<vmem>>, %arg10: memref<8x64xf32, #tpu.memory_space<vmem>>, %arg11: memref<1x32xf32, #tpu.memory_space<vmem>>, %arg12: memref<1x32xf32, #tpu.memory_space<vmem>>, %arg13: memref<1x32xf32, #tpu.memory_space<vmem>>, %arg14: memref<1x32xf32, #tpu.memory_space<vmem>>, %arg15: memref<16x40xf32, #tpu.memory_space<vmem>>, %arg16: memref<48x32xf32, #tpu.memory_space<vmem>>) attributes {dimension_semantics = [], scalar_prefetch = 0 : i64, scratch_operands = 0 : i64, tpu.core_type = #tpu.core_type<tc>} {
    %c0 = arith.constant 0 : index
    %c0_0 = arith.constant 0 : index
    %0 = vector.load %arg0[%c0, %c0_0] : memref<16x32xf32, #tpu.memory_space<vmem>>, vector<16x32xf32>
    %c0_1 = arith.constant 0 : index
    %c0_2 = arith.constant 0 : index
    %1 = vector.load %arg1[%c0_1, %c0_2] : memref<48x32xf32, #tpu.memory_space<vmem>>, vector<48x32xf32>
    %c0_3 = arith.constant 0 : index
    %c0_4 = arith.constant 0 : index
    %2 = vector.load %arg4[%c0_3, %c0_4] : memref<32x160xf32, #tpu.memory_space<vmem>>, vector<32x160xf32>
    %cst = arith.constant dense<0.000000e+00> : vector<16x160xf32>
    %3 = tpu.matmul %0, %2, %cst {dimension_numbers = #tpu.dot_dimension_numbers<[1], [0], [0], [1], [0, 0, 1, 1], [], []>} : vector<16x32xf32>, vector<32x160xf32>, vector<16x160xf32> -> vector<16x160xf32>
    %c0_5 = arith.constant 0 : index
    %c0_6 = arith.constant 0 : index
    %4 = vector.load %arg5[%c0_5, %c0_6] : memref<1x160xf32, #tpu.memory_space<vmem>>, vector<1x160xf32>
    %5 = vector.broadcast %4 : vector<1x160xf32> to vector<16x160xf32>
    %6 = arith.addf %3, %5 : vector<16x160xf32>
    %7 = vector.extract_strided_slice %6 {offsets = [0, 0], sizes = [16, 32], strides = [1, 1]} : vector<16x160xf32> to vector<16x32xf32>
    %8 = vector.extract_strided_slice %6 {offsets = [0, 32], sizes = [16, 32], strides = [1, 1]} : vector<16x160xf32> to vector<16x32xf32>
    %9 = vector.extract_strided_slice %6 {offsets = [0, 64], sizes = [16, 32], strides = [1, 1]} : vector<16x160xf32> to vector<16x32xf32>
    %10 = vector.extract_strided_slice %6 {offsets = [0, 96], sizes = [16, 32], strides = [1, 1]} : vector<16x160xf32> to vector<16x32xf32>
    %11 = vector.extract_strided_slice %6 {offsets = [0, 128], sizes = [16, 32], strides = [1, 1]} : vector<16x160xf32> to vector<16x32xf32>
    %cst_7 = arith.constant 0.000000e+00 : f32
    %12 = vector.broadcast %cst_7 : f32 to vector<16x32xf32>
    %13 = arith.maximumf %11, %12 : vector<16x32xf32>
    %c0_8 = arith.constant 0 : index
    %c0_9 = arith.constant 0 : index
    %14 = vector.load %arg6[%c0_8, %c0_9] : memref<32x32xf32, #tpu.memory_space<vmem>>, vector<32x32xf32>
    %cst_10 = arith.constant dense<0.000000e+00> : vector<48x32xf32>
    %15 = tpu.matmul %1, %14, %cst_10 {dimension_numbers = #tpu.dot_dimension_numbers<[1], [0], [0], [1], [0, 0, 1, 1], [], []>} : vector<48x32xf32>, vector<32x32xf32>, vector<48x32xf32> -> vector<48x32xf32>
    %c0_11 = arith.constant 0 : index
    %c0_12 = arith.constant 0 : index
    %16 = vector.load %arg7[%c0_11, %c0_12] : memref<1x32xf32, #tpu.memory_space<vmem>>, vector<1x32xf32>
    %17 = vector.broadcast %16 : vector<1x32xf32> to vector<48x32xf32>
    %18 = arith.addf %15, %17 : vector<48x32xf32>
    %c0_13 = arith.constant 0 : index
    %c0_14 = arith.constant 0 : index
    %19 = vector.load %arg8[%c0_13, %c0_14] : memref<32x8xf32, #tpu.memory_space<vmem>>, vector<32x8xf32>
    %cst_15 = arith.constant dense<0.000000e+00> : vector<16x8xf32>
    %20 = tpu.matmul %13, %19, %cst_15 {dimension_numbers = #tpu.dot_dimension_numbers<[1], [0], [0], [1], [0, 0, 1, 1], [], []>} : vector<16x32xf32>, vector<32x8xf32>, vector<16x8xf32> -> vector<16x8xf32>
    %c0_16 = arith.constant 0 : index
    %c0_17 = arith.constant 0 : index
    %21 = vector.load %arg9[%c0_16, %c0_17] : memref<1x8xf32, #tpu.memory_space<vmem>>, vector<1x8xf32>
    %22 = vector.broadcast %21 : vector<1x8xf32> to vector<16x8xf32>
    %23 = arith.addf %20, %22 : vector<16x8xf32>
    %cst_18 = arith.constant dense<0xFF800000> : vector<16xf32>
    %24 = vector.multi_reduction <maximumf>, %23, %cst_18 [1] : vector<16x8xf32> to vector<16xf32>
    %25 = vector.shape_cast %24 : vector<16xf32> to vector<16x1xf32>
    %26 = vector.broadcast %25 : vector<16x1xf32> to vector<16x8xf32>
    %27 = arith.subf %23, %26 : vector<16x8xf32>
    %28 = math.exp %27 : vector<16x8xf32>
    %cst_19 = arith.constant dense<0.000000e+00> : vector<16xf32>
    %29 = vector.multi_reduction <add>, %28, %cst_19 [1] : vector<16x8xf32> to vector<16xf32>
    %30 = vector.shape_cast %29 : vector<16xf32> to vector<16x1xf32>
    %31 = tpu.reciprocal %30 {approx = true} : vector<16x1xf32> -> vector<16x1xf32>
    %32 = vector.broadcast %31 : vector<16x1xf32> to vector<16x8xf32>
    %33 = arith.mulf %28, %32 : vector<16x8xf32>
    %c0_20 = arith.constant 0 : index
    %c0_21 = arith.constant 0 : index
    %34 = vector.load %arg10[%c0_20, %c0_21] : memref<8x64xf32, #tpu.memory_space<vmem>>, vector<8x64xf32>
    %cst_22 = arith.constant dense<0.000000e+00> : vector<16x64xf32>
    %35 = tpu.matmul %33, %34, %cst_22 {dimension_numbers = #tpu.dot_dimension_numbers<[1], [0], [0], [1], [0, 0, 1, 1], [], []>} : vector<16x8xf32>, vector<8x64xf32>, vector<16x64xf32> -> vector<16x64xf32>
    %36 = vector.extract_strided_slice %35 {offsets = [0, 0], sizes = [16, 32], strides = [1, 1]} : vector<16x64xf32> to vector<16x32xf32>
    %37 = arith.addf %9, %36 : vector<16x32xf32>
    %38 = vector.extract_strided_slice %35 {offsets = [0, 32], sizes = [16, 32], strides = [1, 1]} : vector<16x64xf32> to vector<16x32xf32>
    %39 = arith.addf %10, %38 : vector<16x32xf32>
    %c0_23 = arith.constant 0 : index
    %c0_24 = arith.constant 0 : index
    %40 = vector.load %arg2[%c0_23, %c0_24] : memref<48x16xbf16, #tpu.memory_space<vmem>>, vector<48x16xbf16>
    %c0_25 = arith.constant 0 : index
    %c0_26 = arith.constant 0 : index
    %41 = vector.load %arg3[%c0_25, %c0_26] : memref<48x16xbf16, #tpu.memory_space<vmem>>, vector<48x16xbf16>
    %42 = tpu.concatenate %37, %8 in 1 : vector<16x32xf32>, vector<16x32xf32> -> vector<16x64xf32>
    %43 = arith.truncf %42 : vector<16x64xf32> to vector<16x64xbf16>
    %cst_27 = arith.constant dense<0.000000e+00> : vector<48x64xf32>
    %44 = tpu.matmul %40, %43, %cst_27 {dimension_numbers = #tpu.dot_dimension_numbers<[1], [0], [0], [1], [0, 0, 1, 1], [], []>} : vector<48x16xbf16>, vector<16x64xbf16>, vector<48x64xf32> -> vector<48x64xf32>
    %45 = arith.truncf %39 : vector<16x32xf32> to vector<16x32xbf16>
    %cst_28 = arith.constant dense<0.000000e+00> : vector<48x32xf32>
    %46 = tpu.matmul %41, %45, %cst_28 {dimension_numbers = #tpu.dot_dimension_numbers<[1], [0], [0], [1], [0, 0, 1, 1], [], []>} : vector<48x16xbf16>, vector<16x32xbf16>, vector<48x32xf32> -> vector<48x32xf32>
    %47 = vector.extract_strided_slice %44 {offsets = [0, 0], sizes = [48, 32], strides = [1, 1]} : vector<48x64xf32> to vector<48x32xf32>
    %48 = arith.addf %47, %46 : vector<48x32xf32>
    %49 = arith.addf %48, %18 : vector<48x32xf32>
    %50 = vector.extract_strided_slice %44 {offsets = [0, 32], sizes = [48, 32], strides = [1, 1]} : vector<48x64xf32> to vector<48x32xf32>
    %51 = arith.negf %49 : vector<48x32xf32>
    %52 = math.exp %51 : vector<48x32xf32>
    %cst_29 = arith.constant 1.000000e+00 : f32
    %53 = vector.broadcast %cst_29 : f32 to vector<48x32xf32>
    %54 = arith.addf %53, %52 : vector<48x32xf32>
    %55 = arith.divf %53, %54 : vector<48x32xf32>
    %56 = arith.mulf %50, %55 : vector<48x32xf32>
    %57 = tpu.concatenate %56, %55 in 1 : vector<48x32xf32>, vector<48x32xf32> -> vector<48x64xf32>
    %58 = arith.truncf %57 : vector<48x64xf32> to vector<48x64xbf16>
    %cst_30 = arith.constant dense<0.000000e+00> : vector<16x64xf32>
    %59 = tpu.matmul %41, %58, %cst_30 {dimension_numbers = #tpu.dot_dimension_numbers<[0], [0], [1], [1], [0, 1, 1, 1], [], []>} : vector<48x16xbf16>, vector<48x64xbf16>, vector<16x64xf32> -> vector<16x64xf32>
    %60 = vector.extract_strided_slice %59 {offsets = [0, 0], sizes = [16, 32], strides = [1, 1]} : vector<16x64xf32> to vector<16x32xf32>
    %61 = vector.extract_strided_slice %59 {offsets = [0, 32], sizes = [16, 32], strides = [1, 1]} : vector<16x64xf32> to vector<16x32xf32>
    %cst_31 = arith.constant 9.99999997E-7 : f32
    %62 = vector.broadcast %cst_31 : f32 to vector<16x32xf32>
    %63 = arith.addf %61, %62 : vector<16x32xf32>
    %64 = tpu.reciprocal %63 {approx = true} : vector<16x32xf32> -> vector<16x32xf32>
    %65 = arith.mulf %60, %64 : vector<16x32xf32>
    %66 = arith.addf %7, %65 : vector<16x32xf32>
    %c0_32 = arith.constant 0 : index
    %c0_33 = arith.constant 0 : index
    %67 = vector.load %arg11[%c0_32, %c0_33] : memref<1x32xf32, #tpu.memory_space<vmem>>, vector<1x32xf32>
    %c0_34 = arith.constant 0 : index
    %c0_35 = arith.constant 0 : index
    %68 = vector.load %arg12[%c0_34, %c0_35] : memref<1x32xf32, #tpu.memory_space<vmem>>, vector<1x32xf32>
    %cst_36 = arith.constant dense<0.000000e+00> : vector<32xf32>
    %69 = vector.multi_reduction <add>, %66, %cst_36 [0] : vector<16x32xf32> to vector<32xf32>
    %70 = vector.shape_cast %69 : vector<32xf32> to vector<1x32xf32>
    %cst_37 = arith.constant 6.250000e-02 : f32
    %71 = vector.broadcast %cst_37 : f32 to vector<1x32xf32>
    %72 = arith.mulf %70, %71 : vector<1x32xf32>
    %73 = arith.mulf %66, %66 : vector<16x32xf32>
    %cst_38 = arith.constant dense<0.000000e+00> : vector<32xf32>
    %74 = vector.multi_reduction <add>, %73, %cst_38 [0] : vector<16x32xf32> to vector<32xf32>
    %75 = vector.shape_cast %74 : vector<32xf32> to vector<1x32xf32>
    %cst_39 = arith.constant 6.250000e-02 : f32
    %76 = vector.broadcast %cst_39 : f32 to vector<1x32xf32>
    %77 = arith.mulf %75, %76 : vector<1x32xf32>
    %78 = arith.mulf %72, %72 : vector<1x32xf32>
    %79 = arith.subf %77, %78 : vector<1x32xf32>
    %cst_40 = arith.constant 9.99999974E-6 : f32
    %80 = vector.broadcast %cst_40 : f32 to vector<1x32xf32>
    %81 = arith.addf %79, %80 : vector<1x32xf32>
    %82 = math.rsqrt %81 : vector<1x32xf32>
    %83 = arith.mulf %67, %82 : vector<1x32xf32>
    %84 = arith.mulf %72, %83 : vector<1x32xf32>
    %85 = arith.subf %68, %84 : vector<1x32xf32>
    %86 = vector.broadcast %83 : vector<1x32xf32> to vector<16x32xf32>
    %87 = arith.mulf %66, %86 : vector<16x32xf32>
    %88 = vector.broadcast %85 : vector<1x32xf32> to vector<16x32xf32>
    %89 = arith.addf %87, %88 : vector<16x32xf32>
    %cst_41 = arith.constant 0.000000e+00 : f32
    %90 = vector.broadcast %cst_41 : f32 to vector<16x32xf32>
    %91 = arith.maximumf %89, %90 : vector<16x32xf32>
    %c0_42 = arith.constant 0 : index
    %c0_43 = arith.constant 0 : index
    %92 = vector.load %arg13[%c0_42, %c0_43] : memref<1x32xf32, #tpu.memory_space<vmem>>, vector<1x32xf32>
    %c0_44 = arith.constant 0 : index
    %c0_45 = arith.constant 0 : index
    %93 = vector.load %arg14[%c0_44, %c0_45] : memref<1x32xf32, #tpu.memory_space<vmem>>, vector<1x32xf32>
    %cst_46 = arith.constant dense<0.000000e+00> : vector<32xf32>
    %94 = vector.multi_reduction <add>, %49, %cst_46 [0] : vector<48x32xf32> to vector<32xf32>
    %95 = vector.shape_cast %94 : vector<32xf32> to vector<1x32xf32>
    %cst_47 = arith.constant 0.020833334 : f32
    %96 = vector.broadcast %cst_47 : f32 to vector<1x32xf32>
    %97 = arith.mulf %95, %96 : vector<1x32xf32>
    %98 = arith.mulf %49, %49 : vector<48x32xf32>
    %cst_48 = arith.constant dense<0.000000e+00> : vector<32xf32>
    %99 = vector.multi_reduction <add>, %98, %cst_48 [0] : vector<48x32xf32> to vector<32xf32>
    %100 = vector.shape_cast %99 : vector<32xf32> to vector<1x32xf32>
    %cst_49 = arith.constant 0.020833334 : f32
    %101 = vector.broadcast %cst_49 : f32 to vector<1x32xf32>
    %102 = arith.mulf %100, %101 : vector<1x32xf32>
    %103 = arith.mulf %97, %97 : vector<1x32xf32>
    %104 = arith.subf %102, %103 : vector<1x32xf32>
    %cst_50 = arith.constant 9.99999974E-6 : f32
    %105 = vector.broadcast %cst_50 : f32 to vector<1x32xf32>
    %106 = arith.addf %104, %105 : vector<1x32xf32>
    %107 = math.rsqrt %106 : vector<1x32xf32>
    %108 = arith.mulf %92, %107 : vector<1x32xf32>
    %109 = arith.mulf %97, %108 : vector<1x32xf32>
    %110 = arith.subf %93, %109 : vector<1x32xf32>
    %111 = vector.broadcast %108 : vector<1x32xf32> to vector<48x32xf32>
    %112 = arith.mulf %49, %111 : vector<48x32xf32>
    %113 = vector.broadcast %110 : vector<1x32xf32> to vector<48x32xf32>
    %114 = arith.addf %112, %113 : vector<48x32xf32>
    %cst_51 = arith.constant 0.000000e+00 : f32
    %115 = vector.broadcast %cst_51 : f32 to vector<48x32xf32>
    %116 = arith.maximumf %114, %115 : vector<48x32xf32>
    %117 = tpu.concatenate %91, %33 in 1 : vector<16x32xf32>, vector<16x8xf32> -> vector<16x40xf32>
    %c0_52 = arith.constant 0 : index
    %c0_53 = arith.constant 0 : index
    %118 = vector.load %arg15[%c0_52, %c0_53] : memref<16x40xf32, #tpu.memory_space<vmem>>, vector<16x40xf32>
    tpu.vector_store %arg15[%c0_52, %c0_53], %117 {strides = array<i32>} : memref<16x40xf32, #tpu.memory_space<vmem>>, vector<16x40xf32>,
    %c0_54 = arith.constant 0 : index
    %c0_55 = arith.constant 0 : index
    %119 = vector.load %arg16[%c0_54, %c0_55] : memref<48x32xf32, #tpu.memory_space<vmem>>, vector<48x32xf32>
    tpu.vector_store %arg16[%c0_54, %c0_55], %116 {strides = array<i32>} : memref<48x32xf32, #tpu.memory_space<vmem>>, vector<48x32xf32>,
    return
  }
}

</mosaic_0001>

<bundles_post_ra>
// kernel: tpu_custom_call.1
= control target key start
LH: loop header
LB: loop body
LE: loop exit
PB: predicated region body
PF: predicated region fallthrough
CT: control target
= control target key end

     0   :  { %s1760_s0 = inlined_call_operand.vmem [shape: f32[16,32], index: 0, kind: input, shape index: {}]   ;;  %s1761_s1 = inlined_call_operand.vmem [shape: f32[48,32], index: 1, kind: input, shape index: {}]   ;;  %s1762_s2 = inlined_call_operand.vmem [shape: bf16[48,16], index: 2, kind: input, shape index: {}]   ;;  %s1763_s3 = inlined_call_operand.vmem [shape: bf16[48,16], index: 3, kind: input, shape index: {}]   ;;  %s1764_s4 = inlined_call_operand.vmem [shape: f32[32,160], index: 4, kind: input, shape index: {}]   ;;  %s1765_s5 = inlined_call_operand.vmem [shape: f32[1,160], index: 5, kind: input, shape index: {}]   ;;  %s1766_s6 = inlined_call_operand.vmem [shape: f32[32,32], index: 6, kind: input, shape index: {}]   ;;  %s1767_s7 = inlined_call_operand.vmem [shape: f32[1,32], index: 7, kind: input, shape index: {}]   ;;  %s1768_s8 = inlined_call_operand.vmem [shape: f32[32,8], index: 8, kind: input, shape index: {}]   ;;  %s1769_s9 = inlined_call_operand.vmem [shape: f32[1,8], index: 9, kind: input, shape index: {}]   ;;  %s1770_s10 = inlined_call_operand.vmem [shape: f32[8,64], index: 10, kind: input, shape index: {}]   ;;  %s1771_s11 = inlined_call_operand.vmem [shape: f32[1,32], index: 11, kind: input, shape index: {}]   ;;  %s1772_s12 = inlined_call_operand.vmem [shape: f32[1,32], index: 12, kind: input, shape index: {}]   ;;  %s1773_s13 = inlined_call_operand.vmem [shape: f32[1,32], index: 13, kind: input, shape index: {}]   ;;  %s1774_s14 = inlined_call_operand.vmem [shape: f32[1,32], index: 14, kind: input, shape index: {}]   ;;  %s1775_s15 = inlined_call_operand.hbm [shape: f32[16,40], index: 15, kind: output, shape index: {0}]   ;;  %s1776_s16 = inlined_call_operand.vmem [shape: f32[48,32], index: 16, kind: output, shape index: {1}]  }
   0x1   :  { %1778 = sst [smem:[#allocation5_spill]] %s1760_s0 }
   0x2   :  { %v63_v0 = vld [vmem:[%s1764_s4 + $0x8] sm:$0xff]  ;;  %v65_v1 = vld [vmem:[%s1764_s4 + $0x18] sm:$0xff]  ;;  %v62_v2 = vld [vmem:[%s1764_s4] sm:$0xff]  ;;  %v1306_v7 = vmov 0.0   ;;  %s1779_s24 = sld [smem:[#allocation5_spill]]  ;;  %vm82_vm0 = vcmask 261120  }
   0x3   :  { %v1183_v3 = vpack.c.bf16 %v65_v1, %v63_v0  ;;  %v64_v4 = vld [vmem:[%s1764_s4 + $0x10] sm:$0xff]  ;;  %v67_v5 = vld [vmem:[%s1764_s4 + $0x28] sm:$0xff]  ;;  %v69_v6 = vld [vmem:[%s1764_s4 + $0x38] sm:$0xff]  ;;  %153 = vmatprep.mubr.f32.mxu0 %v1306_v7 }
   0x4   :  { %v1185_v8 = vpack.c.bf16 %v64_v4, %v62_v2  ;;  %v1187_v9 = vpack.c.bf16 %v69_v6, %v67_v5  ;;  %v66_v10 = vld [vmem:[%s1764_s4 + $0x20] sm:$0xff]  ;;  %v68_v11 = vld [vmem:[%s1764_s4 + $0x30] sm:$0xff] }
   0x5   :  { %1184 = vmatprep.subr.bf16.mxu0 %v1183_v3  ;;  %v1189_v12 = vpack.c.bf16 %v68_v11, %v66_v10 }
   0x6   :  { %1186 = vmatpush1.bf16.msra.mxu0 %v1185_v8 }
   0x7   :  { %1188 = vmatprep.subr.bf16.mxu0 %v1187_v9 }
   0x8   :  { %v54_v13 = vld [vmem:[%s1779_s24] sm:$0xff] }
   0xa   :  { %1190 = vmatpush1.bf16.msra.mxu0 %v1189_v12 }
   0xb   :  { %22 = vsyncpa [#allocation3], 0  ;;  %v55_v14 = vld [vmem:[%s1779_s24 + $0x8] sm:$0xff]  ;;  %v292_v15 = vld [vmem:[%s1768_s8] sm:$0xff]  ;;  %v72_v21 = vlaneseq  ;;  %vm384_vm1 = vcmask 64512   ;;  %s1307_s30 = smov 64  }
   0xc   :  { %v293_v16 = vld [vmem:[%s1768_s8 + $0x8] sm:$0xff]  ;;  %v294_v18 = vld [vmem:[%s1768_s8 + $0x10] sm:$0xff]  ;;  %v295_v19 = vld [vmem:[%s1768_s8 + $0x18] sm:$0xff]  ;;  %vm1308_vm2 = vmmov 0   ;;  %vm537_vm3 = vcmask 130048   ;;  %s1310_s25 = smov 96  }
   0xd   :  { %1048 = vmatmul.mubr.msk.f32.vlgmr.msra.gmra.mrb[0].mxu0 %vm82_vm0, %v54_v13  ;;  %v1199_v17 = vpack.c.bf16 %v293_v16, %v292_v15  ;;  %v1203_v20 = vpack.c.bf16 %v295_v19, %v294_v18  ;;  %v1445_v22 = vshrl.u32 %v72_v21, 7  ;;  %v1451_v24 = vld [vmem:[%s1765_s5] sm:$0x3]  ;;  %v169_v59 = vld [vmem:[%s1766_s6 + $0x8] sm:$0xff]  ;;  %v170_v60 = vld [vmem:[%s1766_s6 + $0x10] sm:$0xff]  ;;  %vm820_vm4 = vcmask 392192  }
   0xe   :  { %159 = vmatprep.mubr.f32.mxu0 %v1306_v7  ;;  %v1057_v34 = vld [vmem:[%s1769_s9] ss:$0 sm:$0xff]  ;;  %v171_v62 = vld [vmem:[%s1766_s6 + $0x18] sm:$0xff]  ;;  %v57_v3 = vld [vmem:[%s1761_s1 + $0x8] sm:$0xff]  ;;  %s1311_s27 = smov [#allocation2]   ;;  %vm1019_vm5 = vcmask 326656  }
   0xf   :  { %1200 = vmatprep.subr.bf16.mxu0 %v1199_v17  ;;  %v78_v23 = vsub.s32 1, %v1445_v22  ;;  %v407_v51 = vld [vmem:[%s1770_s10] sm:$0xff]  ;;  %v1195_v0 = vpack.c.bf16 %v171_v62, %v170_v60  ;;  %v58_v4 = vld [vmem:[%s1761_s1 + $0x10] sm:$0xff]  ;;  %v59_v5 = vld [vmem:[%s1761_s1 + $0x18] sm:$0xff]  ;;  %v1508_v6 = vsub.s32 0, %v1445_v22  ;;  %s1033_s28 = sshll.u32 %s1311_s27, 4  ;;  %s1034_s28 = int_to_ptr.vmem [resolvable:$true] %s1033_s28 }
  0x10   :  { %1202 = vmatpush3.bf16.msra.mxu0 %v1199_v17  ;;  %v168_v58 = vld [vmem:[%s1766_s6] sm:$0xff]  ;;  %v61_v9 = vld [vmem:[%s1761_s1 + $0x28] sm:$0xff]  ;;  %p1287_p1 = scmp.lt.s32.totalorder %s1034_s28, %s1034_s28 }
  0x11   :  { %1049 = vmatmul.mubr.msk.f32.gmra.mrb[2].mxu0 %vm82_vm0, %v55_v14  ;;  %1204 = vmatprep.subr.bf16.mxu0 %v1203_v20  ;;  %v79_v25 = vrot.slane %v1451_v24, %v78_v23  ;;  %v1191_v61 = vpack.c.bf16 %v169_v59, %v168_v58  ;;  %v56_v63 = vld [vmem:[%s1761_s1] sm:$0xff]  ;;  %v75_v10 = vrot.slane %v1451_v24, %v1508_v6 }
  0x12   :  { %1120 = vmatprep.mubr.msk.f32.mxu1 %vm82_vm0, %v56_v63  ;;  %v60_v8 = vld [vmem:[%s1761_s1 + $0x20] sm:$0xff]  ;;  %s1309_s1 = smov 32  }
  0x13   :  { %1192 = vmatprep.subr.bf16.mxu1 %v1191_v61 }
  0x14   :  { %1206 = vmatpush3.bf16.msra.mxu0 %v1203_v20  ;;  %1194 = vmatpush3.bf16.msra.mxu1 %v1191_v61 }
  0x15   :  { %1140 = vmatprep.subr.mxu0 %v407_v51  ;;  %1196 = vmatprep.subr.bf16.mxu1 %v1195_v0 }
  0x18   :  { %1198 = vmatpush3.bf16.msra.mxu1 %v1195_v0 }
  0x19   :  { %1145 = vmatprep.subr.bf16.mxu1 %v1306_v7 }
  0x1b   :  { %1121 = vmatmul.mubr.msk.f32.vlgmr.msra.gmra.mrb[0].mxu1 %vm82_vm0, %v57_v3 }
  0x1c   :  { %1123 = vmatprep.mubr.msk.f32.mxu1 %vm82_vm0, %v58_v4 }
  0x1f   :  { %1124 = vmatmul.mubr.msk.f32.gmra.mrb[2].mxu1 %vm82_vm0, %v59_v5 }
  0x20   :  { %1126 = vmatprep.mubr.msk.f32.mxu1 %vm82_vm0, %v60_v8 }
  0x23   :  { %1127 = vmatmul.mubr.msk.f32.gmra.mrb[4].mxu1 %vm82_vm0, %v61_v9 }
  0x24   :  { %1147 = vmatprep.mubr.msk.bf16.mxu1 %vm1308_vm2, %v1306_v7 }
  0xe0   :  { %v1454_v26 = vpop.f32.mrb[0].mxu0 }
  0xe1   :  { %v157_v27 = vpop.f32.mrb[1].mxu0  ;;  %v1529_v12 = vadd.f32 %v1454_v26, %v75_v10 }
  0xe2   :  { %v158_v28 = vadd.f32 %v157_v27, %v79_v25 }
  0xe4   :  { %v166_v29 = vmax.f32 %v158_v28, 0.0  ;;  %v1456_v30 = vpop.f32.mrb[2].mxu0  ;;  %v1541_v28 = vld [vmem:[%s1763_s3] sm:$0xff]  }
  0xe5   :  { %v163_v31 = vpop.f32.mrb[3].mxu0  ;;  %v1522_v11 = vadd.f32 %v1456_v30, %v75_v10  ;;  %v1557_v30 = vld [vmem:[%s1763_s3 + $0x8] sm:$0xff]  }
  0xe6   :  { %v164_v32 = vadd.f32 %v163_v31, %v79_v25  ;;  %1137 = vmatprep.mubr.msk.f32.mxu0 %vm82_vm0, %v166_v29  ;;  %v1236_v29 = vld [vmem:[%s1762_s2] sm:$0xff]   ;;  %v1238_v31 = vld [vmem:[%s1762_s2 + $0x8] sm:$0xff]  }
  0xe8   :  { %v167_v33 = vmax.f32 %v164_v32, 0.0  ;;  %v1572_v32 = vld [vmem:[%s1763_s3 + $0x10] sm:$0xff]  }
  0xea   :  { %1138 = vmatmul.mubr.msk.f32.vlgmr.msra.gmra.mrb[4].mxu0 %vm82_vm0, %v167_v33  ;;  %v1240_v33 = vld [vmem:[%s1762_s2 + $0x10] sm:$0xff]  }
  0xeb   :  { %1141 = vmatpush3.msra.mxu0 %v407_v51 }
  0xec   :  { %1159 = vmatprep.subr.bf16.mxu0 %v1306_v7 }
  0xee   :  { %v1122_v19 = vpop.f32.mrb[0].mxu1 }
  0xef   :  { %v263_v20 = vpop.f32.mrb[1].mxu1 }
 0x1bd   :  { %v1139_v35 = vpop.f32.mrb[4].mxu0 }
 0x1be   :  { %v375_v36 = vpop.f32.mrb[5].mxu0  ;;  %v381_v38 = vadd.f32 %v1139_v35, %v1057_v34 }
 0x1bf   :  { %v376_v37 = vadd.f32 %v1057_v34, %v375_v36  ;;  %v1125_v34 = vpop.f32.mrb[2].mxu1 }
 0x1c0   :  { %v388_v40 = vsel %vm384_vm1, %v381_v38, -inf  ;;  %v273_v35 = vpop.f32.mrb[3].mxu1 }
 0x1c1   :  { %v385_v39 = vsel %vm384_vm1, %v376_v37, -inf  ;;  %v1582_v36 = vpop.f32.mrb[4].mxu1 }
 0x1c2   :  { %386 = vmax.xlane.f32.xlu0 %v385_v39 }
 0x1c6   :  { %389 = vmax.xlane.f32.xlu0 %v388_v40 }
 0x24f   :  { %v387_v41 = vpop.xlane.xlu0 %386 }
 0x250   :  { %v391_v42 = vsub.f32 %v376_v37, %v387_v41  ;;  %v283_v37 = vpop.f32.mrb[5].mxu1 }
 0x252   :  { %v393_v43 = vmul.f32 1.442695, %v391_v42 }
 0x253   :  { %v390_v44 = vpop.xlane.xlu0 %389 }
 0x254   :  { %1242 = vpow2.f32 %v393_v43  ;;  %v392_v45 = vsub.f32 %v381_v38, %v390_v44  ;;  %v1587_v38 = vld [vmem:[%s1767_s7] ss:$0 sm:$0xff] }
 0x255   :  { %v264_v42 = vadd.f32 %v1587_v38, %v263_v20 }
 0x256   :  { %v395_v46 = vmul.f32 1.442695, %v392_v45 }
 0x258   :  { %1244 = vpow2.f32 %v395_v46 }
 0x25e   :  { %v1243_v47 = vpop.eup %1242 }
 0x25f   :  { %v397_v48 = vsel %vm384_vm1, %v1243_v47, 0.0 }
 0x260   :  { %398 = vadd.xlane.f32.xlu1 %v397_v48  ;;  %v269_v48 = vadd.f32 %v1122_v19, %v1587_v38 }
 0x262   :  { %v1245_v49 = vpop.eup %1244 }
 0x263   :  { %v400_v50 = vsel %vm384_vm1, %v1245_v49, 0.0 }
 0x264   :  { %401 = vadd.xlane.f32.xlu1 %v400_v50 }
 0x2ed   :  { %v399_v52 = vpop.xlane.xlu1 %398 }
 0x2ee   :  { %1246 = vrcp.f32 %v399_v52 }
 0x2f1   :  { %v402_v53 = vpop.xlane.xlu1 %401 }
 0x2f2   :  { %1248 = vrcp.f32 %v402_v53 }
 0x2f8   :  { %v1247_v54 = vpop.eup %1246 }
 0x2f9   :  { %v1471_v55 = vmul.f32 %v1247_v54, %v1243_v47 }
 0x2fb   :  { %1142 = vmatprep.mubr.msk.f32.mxu0 %vm384_vm1, %v1471_v55 }
 0x2fc   :  { %v1249_v56 = vpop.eup %1248 }
 0x2fd   :  { %v1475_v57 = vmul.f32 %v1249_v56, %v1245_v49 }
 0x2ff   :  { %1143 = vmatmul.mubr.msk.f32.vlgmr.msra.gmra.mrb[6].mxu0 %vm384_vm1, %v1475_v57 }
 0x300   :  { %1161 = vmatprep.mubr.msk.bf16.mxu0 %vm1308_vm2, %v1306_v7 }
 0x3d2   :  { %v1144_v1 = vpop.f32.mrb[6].mxu0 }
 0x3d3   :  { %493 = vrot.lane.b32.xlu1 %v1144_v1, %s1307_s30  ;;  %v480_v2 = vpop.f32.mrb[7].mxu0  ;;  %v274_v1 = vadd.f32 %v1587_v38, %v273_v35 }
 0x3d4   :  { %491 = vrot.lane.b32.xlu0 %v480_v2, %s1307_s30 }
 0x445   :  { %v494_v13 = vpop.permute.xlu1 %493 }
 0x446   :  { %v498_v14 = vadd.f32 %v494_v13, %v1522_v11  ;;  %v492_v15 = vpop.permute.xlu0 %491  ;;  %v279_v13 = vadd.f32 %v1125_v34, %v1587_v38 }
 0x447   :  { %v497_v16 = vadd.f32 %v492_v15, %v1529_v12 }
 0x449   :  { %v1216_v17 = vpack.i.bf16 %v498_v14, %v497_v16  ;;  %v604_v18 = vpack.c.bf16 %v498_v14, %v497_v16 }
 0x44b   :  { %1217 = vrot.lane.b32.xlu1 %v1216_v17, %s1307_s30 }
 0x44f   :  { %621 = vrot.lane.b32.xlu1 %v604_v18, %s1309_s1 }
 0x4bd   :  { %v1218_v21 = vpop.permute.xlu1 %1217 }
 0x4be   :  { %v1220_v22 = vunpack.i.h.bf16 %v1218_v21  ;;  %v1219_v23 = vunpack.i.l.bf16 %v1218_v21 }
 0x4c0   :  { %v520_v24 = vsel %vm82_vm0, %v1220_v22, %v1522_v11  ;;  %v519_v25 = vsel %vm82_vm0, %v1219_v23, %v1529_v12 }
 0x4c1   :  { %v521_v26 = vpack.c.bf16 %v520_v24, %v519_v25  ;;  %v622_v27 = vpop.permute.xlu1 %621 }
 0x4c2   :  { %1160 = vmatpush3.bf16.msra.mxu0 %v622_v27 }
 0x4c3   :  { %1146 = vmatpush3.bf16.msra.mxu1 %v521_v26 }
 0x4c4   :  { %1173 = vmatprep.subr.bf16.mxu1 %v1306_v7 }
 0x4c5   :  { %1162 = vmatmul.mubr.msk.bf16.vlgmr.msra.gmra.mrb[8].mxu0 %vm537_vm3, %v1541_v28 }
 0x4c6   :  { %1148 = vmatmul.mubr.msk.bf16.vlgmr.msra.gmra.mrb[8].mxu1 %vm537_vm3, %v1236_v29  ;;  %1165 = vmatprep.mubr.msk.bf16.mxu0 %vm1308_vm2, %v1306_v7 }
 0x4c7   :  { %1151 = vmatprep.mubr.msk.bf16.mxu1 %vm1308_vm2, %v1306_v7 }
 0x4cd   :  { %1166 = vmatmul.mubr.msk.bf16.gmra.mrb[12].mxu0 %vm537_vm3, %v1557_v30 }
 0x4ce   :  { %1152 = vmatmul.mubr.msk.bf16.gmra.mrb[12].mxu1 %vm537_vm3, %v1238_v31  ;;  %1169 = vmatprep.mubr.msk.bf16.mxu0 %vm1308_vm2, %v1306_v7 }
 0x4cf   :  { %1155 = vmatprep.mubr.msk.bf16.mxu1 %vm1308_vm2, %v1306_v7 }
 0x4d5   :  { %1170 = vmatmul.mubr.msk.bf16.gmra.mrb[16].mxu0 %vm537_vm3, %v1572_v32 }
 0x4d6   :  { %1156 = vmatmul.mubr.msk.bf16.gmra.mrb[16].mxu1 %vm537_vm3, %v1240_v33 }
 0x4d7   :  { %1179 = vmatprep.mubr.msk.bf16.mxu1 %vm1308_vm2, %v1306_v7 }
 0x598   :  { %v667_v39 = vpop.f32.mrb[8].mxu0 }
 0x599   :  { %v1589_v40 = vpop.f32.mrb[8].mxu1  ;;  %v1163_v41 = vpop.f32.mrb[9].mxu0 }
 0x59a   :  { %v690_v43 = vadd.f32 %v667_v39, %v1589_v40  ;;  %v1149_v44 = vpop.f32.mrb[9].mxu1  ;;  %v670_v45 = vpop.f32.mrb[10].mxu0  ;;  %v284_v39 = vadd.f32 %v1587_v38, %v283_v37 }
 0x59b   :  { %v1593_v46 = vpop.f32.mrb[10].mxu1  ;;  %v1164_v47 = vpop.f32.mrb[11].mxu0 }
 0x59c   :  { %v1596_v49 = vadd.f32 %v690_v43, %v264_v42  ;;  %v691_v50 = vadd.f32 %v670_v45, %v1593_v46  ;;  %v1150_v51 = vpop.f32.mrb[11].mxu1 }
 0x59d   :  { %v289_v51 = vadd.f32 %v1582_v36, %v1587_v38 }
 0x59e   :  { %v1074_v52 = vmul.f32 -1.442695, %v1596_v49  ;;  %v1600_v53 = vadd.f32 %v691_v50, %v269_v48  ;;  %v950_v54 = vmul.f32 %v1596_v49, %v1596_v49  ;;  %v932_v56 = vsel %vm82_vm0, %v1596_v49, 0.0 }
 0x5a0   :  { %1250 = vpow2.f32 %v1074_v52  ;;  %v1075_v58 = vmul.f32 -1.442695, %v1600_v53  ;;  %v933_v59 = vsel %vm82_vm0, %v1600_v53, 0.0  ;;  %v675_v60 = vpop.f32.mrb[12].mxu0  ;;  %v951_v62 = vmul.f32 %v1600_v53, %v1600_v53 }
 0x5a1   :  { %v934_v61 = vadd.f32 %v933_v59, %v932_v56  ;;  %v1611_v63 = vpop.f32.mrb[12].mxu1  ;;  %v1167_v0 = vpop.f32.mrb[13].mxu0  ;;  %v956_v5 = vsel %vm82_vm0, %v950_v54, 0.0 }
 0x5a2   :  { %1252 = vpow2.f32 %v1075_v58  ;;  %v692_v2 = vadd.f32 %v675_v60, %v1611_v63  ;;  %v1153_v3 = vpop.f32.mrb[13].mxu1  ;;  %v678_v4 = vpop.f32.mrb[14].mxu0  ;;  %v957_v8 = vsel %vm82_vm0, %v951_v62, 0.0 }
 0x5a3   :  { %v1617_v9 = vpop.f32.mrb[14].mxu1  ;;  %v1168_v10 = vpop.f32.mrb[15].mxu0  ;;  %v958_v14 = vadd.f32 %v957_v8, %v956_v5 }
 0x5a4   :  { %v1620_v15 = vadd.f32 %v692_v2, %v274_v1  ;;  %v693_v16 = vadd.f32 %v678_v4, %v1617_v9  ;;  %v1154_v17 = vpop.f32.mrb[15].mxu1 }
 0x5a6   :  { %v1076_v18 = vmul.f32 -1.442695, %v1620_v15  ;;  %v935_v19 = vsel %vm82_vm0, %v1620_v15, 0.0  ;;  %v952_v20 = vmul.f32 %v1620_v15, %v1620_v15  ;;  %v1628_v21 = vadd.f32 %v693_v16, %v279_v13 }
 0x5a7   :  { %v936_v22 = vadd.f32 %v935_v19, %v934_v61 }
 0x5a8   :  { %1254 = vpow2.f32 %v1076_v18  ;;  %v959_v23 = vsel %vm82_vm0, %v952_v20, 0.0  ;;  %v1077_v24 = vmul.f32 -1.442695, %v1628_v21  ;;  %v937_v25 = vsel %vm82_vm0, %v1628_v21, 0.0  ;;  %v683_v26 = vpop.f32.mrb[16].mxu0 }
 0x5a9   :  { %v960_v27 = vadd.f32 %v959_v23, %v958_v14  ;;  %v938_v29 = vadd.f32 %v937_v25, %v936_v22  ;;  %v953_v31 = vmul.f32 %v1628_v21, %v1628_v21  ;;  %v1636_v33 = vpop.f32.mrb[16].mxu1  ;;  %v1171_v34 = vpop.f32.mrb[17].mxu0 }
 0x5aa   :  { %v1251_v35 = vpop.eup %1250  ;;  %1256 = vpow2.f32 %v1077_v24  ;;  %v694_v41 = vadd.f32 %v683_v26, %v1636_v33  ;;  %v1157_v42 = vpop.f32.mrb[17].mxu1 }
 0x5ab   :  { %v686_v43 = vpop.f32.mrb[18].mxu0  ;;  %v720_v44 = vadd.f32 1.0, %v1251_v35  ;;  %v961_v45 = vsel %vm82_vm0, %v953_v31, 0.0  ;;  %v1641_v47 = vpop.f32.mrb[18].mxu1 }
 0x5ac   :  { %v1172_v48 = vpop.f32.mrb[19].mxu0  ;;  %v1253_v50 = vpop.eup %1252  ;;  %v962_v52 = vadd.f32 %v961_v45, %v960_v27  ;;  %v1645_v54 = vadd.f32 %v694_v41, %v284_v39  ;;  %v695_v37 = vadd.f32 %v686_v43, %v1641_v47 }
 0x5ad   :  { %v1158_v56 = vpop.f32.mrb[19].mxu1  ;;  %1258 = vrcp.f32 %v720_v44  ;;  %v721_v58 = vadd.f32 1.0, %v1253_v50 }
 0x5ae   :  { %v1078_v59 = vmul.f32 -1.442695, %v1645_v54  ;;  %v939_v60 = vsel %vm82_vm0, %v1645_v54, 0.0  ;;  %v954_v61 = vmul.f32 %v1645_v54, %v1645_v54  ;;  %v1653_v62 = vadd.f32 %v695_v37, %v289_v51 }
 0x5af   :  { %1260 = vrcp.f32 %v721_v58  ;;  %v940_v36 = vadd.f32 %v939_v60, %v938_v29 }
 0x5b0   :  { %1262 = vpow2.f32 %v1078_v59  ;;  %v963_v38 = vsel %vm82_vm0, %v954_v61, 0.0  ;;  %v1079_v0 = vmul.f32 -1.442695, %v1653_v62  ;;  %v941_v1 = vsel %vm82_vm0, %v1653_v62, 0.0  ;;  %v930_v59 = vld [vmem:[%s1773_s13] sm:$0x1] }
 0x5b1   :  { %v964_v2 = vadd.f32 %v963_v38, %v962_v52  ;;  %v942_v3 = vadd.f32 %v941_v1, %v940_v36  ;;  %v955_v4 = vmul.f32 %v1653_v62, %v1653_v62  ;;  %v931_v36 = vld [vmem:[%s1774_s14] sm:$0x1] }
 0x5b2   :  { %v1255_v5 = vpop.eup %1254  ;;  %1264 = vpow2.f32 %v1079_v0 }
 0x5b3   :  { %v722_v8 = vadd.f32 1.0, %v1255_v5  ;;  %v943_v10 = vrot.slane %v942_v3, 4  ;;  %v965_v13 = vsel %vm82_vm0, %v955_v4, 0.0 }
 0x5b4   :  { %v1257_v14 = vpop.eup %1256  ;;  %v966_v16 = vadd.f32 %v965_v13, %v964_v2 }
 0x5b5   :  { %1266 = vrcp.f32 %v722_v8  ;;  %v723_v17 = vadd.f32 1.0, %v1257_v14  ;;  %v944_v18 = vadd.f32 %v943_v10, %v942_v3 }
 0x5b6   :  { %v967_v19 = vrot.slane %v966_v16, 4 }
 0x5b7   :  { %v1259_v20 = vpop.eup %1258  ;;  %1268 = vrcp.f32 %v723_v17  ;;  %v945_v22 = vrot.slane %v944_v18, 2 }
 0x5b8   :  { %v968_v23 = vadd.f32 %v967_v19, %v966_v16  ;;  %744 = vrot.lane.b32.xlu0 %v1259_v20, %s1309_s1 }
 0x5b9   :  { %v1261_v24 = vpop.eup %1260  ;;  %v946_v25 = vadd.f32 %v945_v22, %v944_v18 }
 0x5ba   :  { %v1263_v26 = vpop.eup %1262  ;;  %v969_v27 = vrot.slane %v968_v23, 2  ;;  %746 = vrot.lane.b32.xlu1 %v1261_v24, %s1309_s1 }
 0x5bb   :  { %v724_v29 = vadd.f32 1.0, %v1263_v26  ;;  %v947_v31 = vrot.slane %v946_v25, 1 }
 0x5bc   :  { %v1265_v34 = vpop.eup %1264  ;;  %v970_v35 = vadd.f32 %v969_v27, %v968_v23 }
 0x5bd   :  { %1270 = vrcp.f32 %v724_v29  ;;  %v725_v39 = vadd.f32 1.0, %v1265_v34  ;;  %v948_v41 = vadd.f32 %v947_v31, %v946_v25 }
 0x5be   :  { %v971_v42 = vrot.slane %v970_v35, 1 }
 0x5bf   :  { %v1267_v43 = vpop.eup %1266  ;;  %1272 = vrcp.f32 %v725_v39  ;;  %v949_v44 = vmul.f32 0.020833334, %v948_v41 }
 0x5c0   :  { %v972_v45 = vadd.f32 %v971_v42, %v970_v35  ;;  %748 = vrot.lane.b32.xlu0 %v1267_v43, %s1309_s1 }
 0x5c1   :  { %v1269_v48 = vpop.eup %1268  ;;  %v974_v50 = vmul.f32 %v949_v44, %v949_v44 }
 0x5c2   :  { %v973_v51 = vmul.f32 0.020833334, %v972_v45  ;;  %750 = vrot.lane.b32.xlu1 %v1269_v48, %s1309_s1 }
 0x5c4   :  { %v975_v52 = vsub.f32 %v973_v51, %v974_v50 }
 0x5c6   :  { %v976_v37 = vadd.f32 1e-05, %v975_v52 }
 0x5c7   :  { %v1271_v56 = vpop.eup %1270 }
 0x5c8   :  { %1274 = vrsqrt.f32 %v976_v37  ;;  %752 = vrot.lane.b32.xlu0 %v1271_v56, %s1309_s1 }
 0x5c9   :  { %v1273_v58 = vpop.eup %1272 }
 0x5ca   :  { %754 = vrot.lane.b32.xlu1 %v1273_v58, %s1309_s1 }
 0x5d2   :  { %v1275_v60 = vpop.eup %1274 }
 0x5d3   :  { %v978_v61 = vmul.f32 %v1275_v60, %v930_v59 }
 0x5d5   :  { %v979_v38 = vmul.f32 %v978_v61, %v949_v44  ;;  %v985_v0 = vrot.slane %v978_v61, %v1508_v6 }
 0x5d7   :  { %v980_v1 = vsub.f32 %v931_v36, %v979_v38  ;;  %v987_v2 = vmul.f32 %v985_v0, %v1596_v49  ;;  %v988_v3 = vmul.f32 %v985_v0, %v1600_v53  ;;  %v989_v4 = vmul.f32 %v985_v0, %v1620_v15 }
 0x5d8   :  { %v990_v5 = vmul.f32 %v985_v0, %v1628_v21  ;;  %v991_v8 = vmul.f32 %v985_v0, %v1645_v54  ;;  %v992_v10 = vmul.f32 %v985_v0, %v1653_v62 }
 0x5d9   :  { %v997_v13 = vrot.slane %v980_v1, %v1508_v6 }
 0x5db   :  { %v999_v14 = vadd.f32 %v997_v13, %v987_v2  ;;  %v1000_v16 = vadd.f32 %v997_v13, %v988_v3  ;;  %v1001_v17 = vadd.f32 %v997_v13, %v989_v4  ;;  %v1002_v18 = vadd.f32 %v997_v13, %v990_v5 }
 0x5dc   :  { %v1003_v19 = vadd.f32 %v997_v13, %v991_v8  ;;  %v1004_v20 = vadd.f32 %v997_v13, %v992_v10 }
 0x5dd   :  { %v1005_v22 = vmax.f32 %v999_v14, 0.0  ;;  %v1006_v49 = vmax.f32 %v1000_v16, 0.0  ;;  %v1007_v23 = vmax.f32 %v1001_v17, 0.0  ;;  %v1008_v53 = vmax.f32 %v1002_v18, 0.0 }
 0x5de   :  { %v1009_v24 = vmax.f32 %v1003_v19, 0.0  ;;  %v1010_v15 = vmax.f32 %v1004_v20, 0.0 }
 0x5df   :  { %1022 = vst.msk [vmem:[%s1776_s16] sm:$0xff] %vm82_vm0, %v1005_v22  ;;  %1023 = vst.msk [vmem:[%s1776_s16 + $0x8] sm:$0xff] %vm82_vm0, %v1006_v49 }
 0x5e0   :  { %1024 = vst.msk [vmem:[%s1776_s16 + $0x10] sm:$0xff] %vm82_vm0, %v1007_v23  ;;  %1025 = vst.msk [vmem:[%s1776_s16 + $0x18] sm:$0xff] %vm82_vm0, %v1008_v53 }
 0x5e1   :  { %1026 = vst.msk [vmem:[%s1776_s16 + $0x20] sm:$0xff] %vm82_vm0, %v1009_v24  ;;  %1027 = vst.msk [vmem:[%s1776_s16 + $0x28] sm:$0xff] %vm82_vm0, %v1010_v15 }
 0x62a   :  { %v745_v21 = vpop.permute.xlu0 %744 }
 0x62b   :  { %v762_v62 = vmul.f32 %v745_v21, %v1589_v40 }
 0x62c   :  { %v747_v54 = vpop.permute.xlu1 %746 }
 0x62d   :  { %v763_v25 = vmul.f32 %v747_v54, %v1593_v46 }
 0x62f   :  { %v1221_v26 = vpack.i.bf16 %v763_v25, %v762_v62 }
 0x631   :  { %1222 = vrot.lane.b32.xlu0 %v1221_v26, %s1310_s25 }
 0x632   :  { %v749_v27 = vpop.permute.xlu0 %748 }
 0x633   :  { %v764_v31 = vmul.f32 %v749_v27, %v1611_v63 }
 0x634   :  { %v751_v29 = vpop.permute.xlu1 %750 }
 0x635   :  { %v765_v34 = vmul.f32 %v751_v29, %v1617_v9 }
 0x637   :  { %v1226_v35 = vpack.i.bf16 %v765_v34, %v764_v31 }
 0x639   :  { %1227 = vrot.lane.b32.xlu1 %v1226_v35, %s1310_s25 }
 0x63a   :  { %v753_v39 = vpop.permute.xlu0 %752 }
 0x63b   :  { %v766_v42 = vmul.f32 %v753_v39, %v1636_v33 }
 0x63c   :  { %v755_v41 = vpop.permute.xlu1 %754 }
 0x63d   :  { %v767_v40 = vmul.f32 %v755_v41, %v1641_v47 }
 0x63f   :  { %v1231_v46 = vpack.i.bf16 %v767_v40, %v766_v42  ;;  %v882_v40 = vld [vmem:[%s1772_s12] sm:$0x1] }
 0x641   :  { %1232 = vrot.lane.b32.xlu0 %v1231_v46, %s1310_s25 }
 0x65c   :  { %804 = vxpose.xlu1.c.b16.start [1/3] (short) (narrow) %v1541_v28, 16 }
 0x660   :  { %805 = vxpose.xlu1.c.b16.cont [2/3] (short) (narrow) %v1557_v30, 16 }
 0x664   :  { %806 = vxpose.xlu1.c.b16.end [3/3] (short) (narrow) %v1572_v32, 16 }
 0x6a3   :  { %v1223_v63 = vpop.permute.xlu0 %1222 }
 0x6a4   :  { %v1225_v9 = vunpack.i.h.bf16 %v1223_v63  ;;  %v1224_v43 = vunpack.i.l.bf16 %v1223_v63 }
 0x6a6   :  { %v793_v44 = vsel %vm82_vm0, %v1225_v9, %v747_v54  ;;  %v792_v45 = vsel %vm82_vm0, %v1224_v43, %v745_v21 }
 0x6a7   :  { %v798_v48 = vpack.c.bf16 %v793_v44, %v792_v45 }
 0x6a9   :  { %1174 = vmatpush3.bf16.msra.mxu1 %v798_v48 }
 0x6aa   :  { %1175 = vmatprep.subr.bf16.mxu1 %v1306_v7 }
 0x6ab   :  { %v1228_v33 = vpop.permute.xlu1 %1227 }
 0x6ac   :  { %v1230_v47 = vunpack.i.h.bf16 %v1228_v33  ;;  %v1229_v50 = vunpack.i.l.bf16 %v1228_v33 }
 0x6ae   :  { %v795_v28 = vsel %vm82_vm0, %v1230_v47, %v751_v29  ;;  %v794_v30 = vsel %vm82_vm0, %v1229_v50, %v749_v27 }
 0x6af   :  { %v799_v51 = vpack.c.bf16 %v795_v28, %v794_v30 }
 0x6b1   :  { %1176 = vmatpush3.bf16.msra.mxu1 %v799_v51 }
 0x6b2   :  { %1177 = vmatprep.subr.bf16.mxu1 %v1306_v7 }
 0x6b3   :  { %v1233_v32 = vpop.permute.xlu0 %1232 }
 0x6b4   :  { %v1235_v52 = vunpack.i.h.bf16 %v1233_v32  ;;  %v1234_v37 = vunpack.i.l.bf16 %v1233_v32 }
 0x6b6   :  { %v797_v56 = vsel %vm82_vm0, %v1235_v52, %v755_v41  ;;  %v796_v58 = vsel %vm82_vm0, %v1234_v37, %v753_v39  ;;  %v881_v39 = vld [vmem:[%s1771_s11] sm:$0x1]  ;;  %s1282_s11 = scalar_lea.vmem %s1034_s28, 256 }
 0x6b7   :  { %v800_v59 = vpack.c.bf16 %v797_v56, %v796_v58  ;;  %p1283_p0 = scmp.ne.s32.totalorder %s1034_s28, %s1282_s11  ;;  %p1288_p2 = scmp.lt.s32.totalorder %s1282_s11, %s1282_s11 }
 0x6b9   :  { %1178 = vmatpush3.bf16.msra.mxu1 %v800_v59  ;;  %p1289_p3 = por %p1288_p2, %p1287_p1 }
 0x6bb   :  { %p1290_p4 = pnand %p1289_p3, %p1283_p0 }
 0x6c2   :  { %v812_v60 = vpop.trf.xlu1 }
 0x6c3   :  { %1180 = vmatmul.mubr.msk.bf16.vlgmr.msra.gmra.mrb[20].mxu1 %vm820_vm4, %v812_v60 }
 0x796   :  { %v858_v61 = vpop.f32.mrb[20].mxu1 }
 0x797   :  { %v865_v36 = vadd.f32 1e-06, %v858_v61  ;;  %v1181_v38 = vpop.f32.mrb[21].mxu1 }
 0x798   :  { %v861_v0 = vpop.f32.mrb[22].mxu1 }
 0x799   :  { %1276 = vrcp.f32 %v865_v36  ;;  %v866_v1 = vadd.f32 1e-06, %v861_v0  ;;  %v1182_v2 = vpop.f32.mrb[23].mxu1 }
 0x79b   :  { %1278 = vrcp.f32 %v866_v1 }
 0x7a3   :  { %v1277_v7 = vpop.eup %1276 }
 0x7a4   :  { %871 = vrot.lane.b32.xlu0 %v1277_v7, %s1310_s25 }
 0x7a5   :  { %v1279_v3 = vpop.eup %1278 }
 0x7a8   :  { %873 = vrot.lane.b32.xlu0 %v1279_v3, %s1310_s25 }
 0x7ac   :  { %1011 = vrot.lane.b32.xlu0 %v1471_v55, %s1309_s1 }
 0x7b0   :  { %1013 = vrot.lane.b32.xlu0 %v1475_v57, %s1309_s1 }
 0x816   :  { %v872_v4 = vpop.permute.xlu0 %871 }
 0x817   :  { %v877_v5 = vmul.f32 %v872_v4, %v858_v61 }
 0x819   :  { %v879_v8 = vadd.f32 %v877_v5, %v1529_v12 }
 0x81a   :  { %v874_v10 = vpop.permute.xlu0 %873 }
 0x81b   :  { %v878_v13 = vmul.f32 %v874_v10, %v861_v0  ;;  %v893_v14 = vmul.f32 %v879_v8, %v879_v8  ;;  %v883_v17 = vsel %vm82_vm0, %v879_v8, 0.0 }
 0x81d   :  { %v880_v16 = vadd.f32 %v878_v13, %v1522_v11  ;;  %v895_v55 = vsel %vm82_vm0, %v893_v14, 0.0 }
 0x81e   :  { %v1012_v45 = vpop.permute.xlu0 %1011 }
 0x81f   :  { %v884_v18 = vsel %vm82_vm0, %v880_v16, 0.0  ;;  %v894_v19 = vmul.f32 %v880_v16, %v880_v16 }
 0x820   :  { %v885_v20 = vadd.f32 %v884_v18, %v883_v17 }
 0x821   :  { %v896_v22 = vsel %vm82_vm0, %v894_v19, 0.0 }
 0x822   :  { %v886_v57 = vrot.slane %v885_v20, 4  ;;  %v897_v49 = vadd.f32 %v896_v22, %v895_v55  ;;  %v1014_v30 = vpop.permute.xlu0 %1013 }
 0x824   :  { %v887_v23 = vadd.f32 %v886_v57, %v885_v20  ;;  %v898_v53 = vrot.slane %v897_v49, 4 }
 0x826   :  { %v888_v12 = vrot.slane %v887_v23, 2  ;;  %v899_v24 = vadd.f32 %v898_v53, %v897_v49 }
 0x828   :  { %v889_v15 = vadd.f32 %v888_v12, %v887_v23  ;;  %v900_v21 = vrot.slane %v899_v24, 2 }
 0x82a   :  { %v890_v54 = vrot.slane %v889_v15, 1  ;;  %v901_v11 = vadd.f32 %v900_v21, %v899_v24 }
 0x82c   :  { %v891_v62 = vadd.f32 %v890_v54, %v889_v15  ;;  %v902_v25 = vrot.slane %v901_v11, 1 }
 0x82e   :  { %v892_v26 = vmul.f32 0.0625, %v891_v62  ;;  %v903_v27 = vadd.f32 %v902_v25, %v901_v11 }
 0x830   :  { %v904_v29 = vmul.f32 0.0625, %v903_v27  ;;  %v905_v31 = vmul.f32 %v892_v26, %v892_v26 }
 0x832   :  { %v906_v34 = vsub.f32 %v904_v29, %v905_v31 }
 0x834   :  { %v907_v35 = vadd.f32 1e-05, %v906_v34 }
 0x836   :  { %1280 = vrsqrt.f32 %v907_v35 }
 0x840   :  { %v1281_v41 = vpop.eup %1280 }
 0x841   :  { %v909_v42 = vmul.f32 %v1281_v41, %v881_v39 }
 0x843   :  { %v916_v46 = vrot.slane %v909_v42, %v1508_v6  ;;  %v910_v63 = vmul.f32 %v909_v42, %v892_v26 }
 0x845   :  { %v919_v9 = vmul.f32 %v916_v46, %v880_v16  ;;  %v911_v43 = vsub.f32 %v882_v40, %v910_v63  ;;  %v918_v44 = vmul.f32 %v916_v46, %v879_v8 }
 0x847   :  { %v924_v48 = vrot.slane %v911_v43, %v1508_v6 }
 0x849   :  { %v926_v33 = vadd.f32 %v924_v48, %v918_v44  ;;  %v927_v47 = vadd.f32 %v924_v48, %v919_v9 }
 0x84b   :  { %v928_v50 = vmax.f32 %v926_v33, 0.0  ;;  %v929_v28 = vmax.f32 %v927_v47, 0.0 }
 0x84d   :  { %v1017_v51 = vsel %vm82_vm0, %v928_v50, %v1012_v45  ;;  %v1018_v32 = vsel %vm82_vm0, %v929_v28, %v1014_v30 }
 0x84e   :  { %1020 = vst.msk [vmem:[#allocation2] sm:$0xff] %vm1019_vm5, %v1017_v51  ;;  %1021 = vst.msk [vmem:[#allocation2 + $0x8] sm:$0xff] %vm1019_vm5, %v1018_v32 }
 0x84f   :  { %1293 = shalt.err (!%p1290_p4)
}
 0x850   :  { %s1294_s30 = scalar_lea.hbm %s1775_s15, 256 }
 0x851   :  { %p1295_p5 = scmp.ne.s32.totalorder %s1775_s15, %s1294_s30  ;;  %p1298_p6 = scmp.lt.u32.totalorder %s1294_s30, %s1775_s15 }
 0x853   :  { %p1300_p7 = pnand %p1298_p6, %p1295_p5 }
 0x855   :  { %1303 = shalt.err (!%p1300_p7)
}
 0x856   :  { %s1312_s7 = smov 128   ;;  %s1313_s6 = smov 8  }
 0x857   :  { %1039 = dma.vmem_to_hbm [thread:$0]  %s1034_s28, 256, %s1775_s15, [#allocation3], %s1312_s7, %s1312_s7, %s1313_s6  }
 0x858   :  { %1304 = dma.done.wait [#allocation3], 256  }
 0x859   :  { %1305 = vsyncadd [#allocation3], 4294967040 }
 0x85a   :  { %1047 = vsyncpa [#allocation3], 1 }

</bundles_post_ra>
